<compile_context>
chip_gen: v6e
topology: v6e:2x2x1
jax: 0.10.0
libtpu: 0.0.40
codegen_flags: <defaults>
</compile_context>

<pallas_src>
import functools

import jax
import jax.numpy as jnp
from jax.experimental import pallas as pl
from jax.experimental.pallas import tpu as pltpu


def _round_up(x, m):
    return ((x + m - 1) // m) * m


# -----------------------------------------------------------------------------
# Kernel: whole MLP (3 matmuls + biases + ReLUs) fused in one body.
# x arrives in its native dtype and is cast to bf16 on the VPU; all dots
# accumulate in f32 on the MXU; bias-add / ReLU stay in f32 (v5e VPU has no
# bf16), casting back to bf16 only at the next dot input.
# -----------------------------------------------------------------------------
def _mlp_kernel(x_ref, w1_ref, b1_ref, w2_ref, b2_ref, w3_ref, b3_ref, o_ref):
    x = x_ref[...].astype(jnp.bfloat16)
    h1 = jnp.dot(x, w1_ref[...], preferred_element_type=jnp.float32)
    h1 = jnp.maximum(h1 + b1_ref[...], 0.0)
    h2 = jnp.dot(h1.astype(jnp.bfloat16), w2_ref[...],
                 preferred_element_type=jnp.float32)
    h2 = jnp.maximum(h2 + b2_ref[...], 0.0)
    y = jnp.dot(h2.astype(jnp.bfloat16), w3_ref[...],
                preferred_element_type=jnp.float32)
    o_ref[...] = (y + b3_ref[...]).astype(o_ref.dtype)


# -----------------------------------------------------------------------------
# Generation-aware hardware query (VMEM capacity, TensorCores per chip).
# -----------------------------------------------------------------------------
def _tpu_vmem_and_cores():
    vmem = 64 * 1024 * 1024  # conservative fallback (v7x per-TC VMEM)
    try:
        vmem = int(pltpu.get_tpu_info().vmem_capacity_bytes)
    except Exception:
        pass
    # v7x: 64 MiB VMEM per TC, 2 TCs/chip.  v5e/v6e: 128 MiB VMEM, 1 TC.
    cores = 2 if vmem <= 80 * 1024 * 1024 else 1
    return vmem, cores


# -----------------------------------------------------------------------------
# VMEM-driven batch-tile sizing.
# -----------------------------------------------------------------------------
def _choose_block_b(E, H, Upad, x_itemsize, out_itemsize, x_bufs,
                    vmem_budget_bytes, weight_copies):
    """Largest batch tile (multiple of 8, <= 2048) that fits the VMEM budget."""
    # bf16 weights + f32 biases; weight_copies = 1 when single-buffered.
    weight_bytes = weight_copies * ((E * H + H * E + E * Upad) * 2
                                    + (H + E + Upad) * 4)
    # Live VMEM per batch row:
    #   x tiles (x_bufs buffers, native dtype) + in-kernel bf16 copy,
    #   h1 (f32 + bf16 copy), h2 (f32 + bf16 copy),
    #   y (f32) + double-buffered output tile in the real output dtype.
    per_row = (x_bufs * E * x_itemsize + 2 * E
               + 6 * H
               + 6 * E
               + 4 * Upad + 2 * Upad * out_itemsize)
    headroom = 4 << 20  # Mosaic internal scratch / layout slack
    avail = vmem_budget_bytes - weight_bytes - headroom
    bb = avail // per_row if avail > 0 else 0
    if bb < 8:
        # TODO(synk): hidden-dimension-tiled kernel (second "arbitrary" grid axis
        # + f32 accumulator scratch) for very large E instead of failing.
        raise ValueError(
            f"PredictorLayer weights (E={E}, H={H}, Uout={Upad}) leave no room for "
            f"an 8-row batch tile within the {vmem_budget_bytes >> 20} MiB VMEM "
            "budget; a hidden-dimension-tiled kernel is required.")
    return min(2048, (bb // 8) * 8)


def _pick_block_b(B, E, H, Upad, itemsize, x_bufs, budget, num_cores,
                  weight_copies, override):
    bb = override if override is not None else _choose_block_b(
        E, H, Upad, itemsize, itemsize, x_bufs, budget, weight_copies)
    # Keep >= 2 grid steps only where it pays off: v7x's two TensorCores.
    if num_cores >= 2 and B >= 16:
        bb = min(bb, _round_up(pl.cdiv(B, num_cores), 8))
    return max(8, min(bb, _round_up(B, 8)))


# -----------------------------------------------------------------------------
# pallas_call wrapper (jitted; all tiling knobs are static).
#   weight_bufs / x_bufs: 0 -> default pipelining, N -> pl.Buffered(N).
# -----------------------------------------------------------------------------
@functools.partial(
    jax.jit,
    static_argnames=("block_b", "u_out", "weight_bufs", "x_bufs",
                     "vmem_limit_bytes"))
def _predictor_call(x, w1, b1, w2, b2, w3, b3, *, block_b, u_out,
                    weight_bufs, x_bufs, vmem_limit_bytes):
    B, E = x.shape
    H = w1.shape[1]
    Upad = w3.shape[1]

    def spec(shape, index_map, bufs):
        if bufs == 0:
            return pl.BlockSpec(shape, index_map)
        return pl.BlockSpec(shape, index_map, pipeline_mode=pl.Buffered(bufs))

    grid = (pl.cdiv(B, block_b),)
    out = pl.pallas_call(
        _mlp_kernel,
        out_shape=jax.ShapeDtypeStruct((B, Upad), x.dtype),
        grid_spec=pltpu.PrefetchScalarGridSpec(
            num_scalar_prefetch=0,
            grid=grid,
            in_specs=[
                # Batch-tiled activation stream.
                spec((block_b, E), lambda i: (i, 0), x_bufs),
                # Grid-invariant weights/biases (fetched once).
                spec((E, H), lambda i: (0, 0), weight_bufs),
                spec((1, H), lambda i: (0, 0), weight_bufs),
                spec((H, E), lambda i: (0, 0), weight_bufs),
                spec((1, E), lambda i: (0, 0), weight_bufs),
                spec((E, Upad), lambda i: (0, 0), weight_bufs),
                spec((1, Upad), lambda i: (0, 0), weight_bufs),
            ],
            out_specs=pl.BlockSpec((block_b, Upad), lambda i: (i, 0)),
        ),
        compiler_params=pltpu.CompilerParams(
            dimension_semantics=("parallel",),
            vmem_limit_bytes=vmem_limit_bytes,
        ),
    )(x, w1, b1, w2, b2, w3, b3)
    # Drop the lane-padding columns (no-op when Upad == u_out).
    return out[:, :u_out] if u_out != Upad else out


# -----------------------------------------------------------------------------
# Public entry points.
# -----------------------------------------------------------------------------
def prepare_params(w1, b1, w2, b2, w3, b3):
    """One-time param prep: bf16 weights, f32 row-vector biases, lane-padded
    last layer.  Do this once at init, not per call."""
    E, H = w1.shape
    U = w3.shape[1]
    Upad = _round_up(U, 128)            # lane-dense output store
    w1b = jnp.asarray(w1, jnp.bfloat16)
    w2b = jnp.asarray(w2, jnp.bfloat16)
    w3b = jnp.asarray(w3, jnp.bfloat16)
    b1f = jnp.asarray(b1, jnp.float32).reshape(1, H)
    b2f = jnp.asarray(b2, jnp.float32).reshape(1, w2.shape[1])
    b3f = jnp.asarray(b3, jnp.float32).reshape(1, U)
    if Upad != U:
        w3b = jnp.pad(w3b, ((0, 0), (0, Upad - U)))
        b3f = jnp.pad(b3f, ((0, 0), (0, Upad - U)))
    return (w1b, b1f, w2b, b2f, w3b, b3f, U)


def predictor_layer(x, params, *, block_b=None):
    """x: (B, E).  params: output of prepare_params.  Returns (B, E // 2)."""
    w1, b1, w2, b2, w3, b3, u_out = params
    B, E = x.shape
    H = w1.shape[1]
    Upad = w3.shape[1]
    itemsize = jnp.dtype(x.dtype).itemsize

    vmem_capacity, num_cores = _tpu_vmem_and_cores()
    vmem_budget = (vmem_capacity * 3) // 4

    # Deeper x pipeline only on the 2-TC (v7x) generation with short steps.
    want_x_bufs = 3 if (num_cores >= 2 and E <= 512) else 2

    try:
        bb = _pick_block_b(B, E, H, Upad, itemsize, want_x_bufs, vmem_budget,
                           num_cores, weight_copies=1, override=block_b)
        steps = pl.cdiv(B, bb)
        x_bufs = want_x_bufs if (want_x_bufs > 2 and steps >= 4) else 0
        return _predictor_call(x, w1, b1, w2, b2, w3, b3,
                               block_b=int(bb), u_out=int(u_out),
                               weight_bufs=1, x_bufs=x_bufs,
                               vmem_limit_bytes=int(vmem_budget))
    except ValueError:
        raise
    except Exception:
        # Fallback for Pallas builds without per-operand pipeline_mode: default
        # double-buffering everywhere, batch tile re-derived with 2x weights.
        bb = _pick_block_b(B, E, H, Upad, itemsize, 2, vmem_budget,
                           num_cores, weight_copies=2, override=block_b)
        return _predictor_call(x, w1, b1, w2, b2, w3, b3,
                               block_b=int(bb), u_out=int(u_out),
                               weight_bufs=0, x_bufs=0,
                               vmem_limit_bytes=int(vmem_budget))


# -----------------------------------------------------------------------------
# Reference / init helpers and self-test.
# -----------------------------------------------------------------------------
def init_params(key, embed_size):
    """Deterministic init mimicking nn.Linear (uniform in +-1/sqrt(fan_in))."""
    E = embed_size
    H = 2 * E
    U = E // 2
    ks = jax.random.split(key, 6)

    def lin(kw, kb, fan_in, fan_out):
        bound = 1.0 / jnp.sqrt(fan_in)
        w = jax.random.uniform(kw, (fan_in, fan_out), jnp.float32, -bound, bound)
        b = jax.random.uniform(kb, (1, fan_out), jnp.float32, -bound, bound)
        return w, b

    w1, b1 = lin(ks[0], ks[1], E, H)
    w2, b2 = lin(ks[2], ks[3], H, E)
    w3, b3 = lin(ks[4], ks[5], E, U)
    return w1, b1, w2, b2, w3, b3


def reference_f32(x, w1, b1, w2, b2, w3, b3):
    h1 = jnp.maximum(x @ w1 + b1, 0.0)
    h2 = jnp.maximum(h1 @ w2 + b2, 0.0)
    return h2 @ w3 + b3


if __name__ == "__main__":
    embed_size = 32
    batch = 8

    key = jax.random.PRNGKey(0)
    kx, kp = jax.random.split(key)
    x = jax.random.normal(kx, (batch, embed_size), jnp.float32)
    raw = init_params(kp, embed_size)
    params = prepare_params(*raw)      # bf16 cast + lane padding, done once

    out = predictor_layer(x, params)
    out = jax.block_until_ready(out)

    ref = reference_f32(x, *raw)
    assert out.shape == (batch, embed_size // 2), out.shape
    # bf16 operands / f32 MXU accumulation vs f32 reference over three layers.
    assert jnp.allclose(out, ref, atol=5e-2, rtol=5e-2), "mismatch vs reference"

    print("KERNEL_OK")
</pallas_src>

<mosaic_0001>
module attributes {stable_mosaic.version = 11 : i64} {
  func.func @_mlp_kernel(%arg0: i32, %arg1: memref<8x32xf32, #tpu.memory_space<vmem>>, %arg2: memref<32x64xbf16, #tpu.memory_space<vmem>>, %arg3: memref<1x64xf32, #tpu.memory_space<vmem>>, %arg4: memref<64x32xbf16, #tpu.memory_space<vmem>>, %arg5: memref<1x32xf32, #tpu.memory_space<vmem>>, %arg6: memref<32x128xbf16, #tpu.memory_space<vmem>>, %arg7: memref<1x128xf32, #tpu.memory_space<vmem>>, %arg8: memref<8x128xf32, #tpu.memory_space<vmem>>) attributes {dimension_semantics = [#tpu.dimension_semantics<parallel>], iteration_bounds = array<i64: 1>, scalar_prefetch = 0 : i64, scratch_operands = 0 : i64, tpu.core_type = #tpu.core_type<tc>, window_params = [{transform_indices = @transform_0, window_bounds = array<i64: 8, 32>}, {pipeline_mode = #tpu.pipeline_mode<synchronous>, transform_indices = @transform_1, window_bounds = array<i64: 32, 64>}, {pipeline_mode = #tpu.pipeline_mode<synchronous>, transform_indices = @transform_2, window_bounds = array<i64: 1, 64>}, {pipeline_mode = #tpu.pipeline_mode<synchronous>, transform_indices = @transform_3, window_bounds = array<i64: 64, 32>}, {pipeline_mode = #tpu.pipeline_mode<synchronous>, transform_indices = @transform_4, window_bounds = array<i64: 1, 32>}, {pipeline_mode = #tpu.pipeline_mode<synchronous>, transform_indices = @transform_5, window_bounds = array<i64: 32, 128>}, {pipeline_mode = #tpu.pipeline_mode<synchronous>, transform_indices = @transform_6, window_bounds = array<i64: 1, 128>}, {transform_indices = @transform_7, window_bounds = array<i64: 8, 128>}]} {
    %c0 = arith.constant 0 : index
    %c0_0 = arith.constant 0 : index
    %0 = vector.load %arg1[%c0, %c0_0] : memref<8x32xf32, #tpu.memory_space<vmem>>, vector<8x32xf32>
    %1 = arith.truncf %0 : vector<8x32xf32> to vector<8x32xbf16>
    %c0_1 = arith.constant 0 : index
    %c0_2 = arith.constant 0 : index
    %2 = vector.load %arg2[%c0_1, %c0_2] : memref<32x64xbf16, #tpu.memory_space<vmem>>, vector<32x64xbf16>
    %cst = arith.constant dense<0.000000e+00> : vector<8x64xf32>
    %3 = tpu.matmul %1, %2, %cst {dimension_numbers = #tpu.dot_dimension_numbers<[1], [0], [0], [1], [0, 0, 1, 1], [], []>} : vector<8x32xbf16>, vector<32x64xbf16>, vector<8x64xf32> -> vector<8x64xf32>
    %c0_3 = arith.constant 0 : index
    %c0_4 = arith.constant 0 : index
    %4 = vector.load %arg3[%c0_3, %c0_4] : memref<1x64xf32, #tpu.memory_space<vmem>>, vector<1x64xf32>
    %5 = vector.broadcast %4 : vector<1x64xf32> to vector<8x64xf32>
    %6 = arith.addf %3, %5 : vector<8x64xf32>
    %cst_5 = arith.constant 0.000000e+00 : f32
    %7 = vector.broadcast %cst_5 : f32 to vector<8x64xf32>
    %8 = arith.maximumf %6, %7 : vector<8x64xf32>
    %9 = arith.truncf %8 : vector<8x64xf32> to vector<8x64xbf16>
    %c0_6 = arith.constant 0 : index
    %c0_7 = arith.constant 0 : index
    %10 = vector.load %arg4[%c0_6, %c0_7] : memref<64x32xbf16, #tpu.memory_space<vmem>>, vector<64x32xbf16>
    %cst_8 = arith.constant dense<0.000000e+00> : vector<8x32xf32>
    %11 = tpu.matmul %9, %10, %cst_8 {dimension_numbers = #tpu.dot_dimension_numbers<[1], [0], [0], [1], [0, 0, 1, 1], [], []>} : vector<8x64xbf16>, vector<64x32xbf16>, vector<8x32xf32> -> vector<8x32xf32>
    %c0_9 = arith.constant 0 : index
    %c0_10 = arith.constant 0 : index
    %12 = vector.load %arg5[%c0_9, %c0_10] : memref<1x32xf32, #tpu.memory_space<vmem>>, vector<1x32xf32>
    %13 = vector.broadcast %12 : vector<1x32xf32> to vector<8x32xf32>
    %14 = arith.addf %11, %13 : vector<8x32xf32>
    %cst_11 = arith.constant 0.000000e+00 : f32
    %15 = vector.broadcast %cst_11 : f32 to vector<8x32xf32>
    %16 = arith.maximumf %14, %15 : vector<8x32xf32>
    %17 = arith.truncf %16 : vector<8x32xf32> to vector<8x32xbf16>
    %c0_12 = arith.constant 0 : index
    %c0_13 = arith.constant 0 : index
    %18 = vector.load %arg6[%c0_12, %c0_13] : memref<32x128xbf16, #tpu.memory_space<vmem>>, vector<32x128xbf16>
    %cst_14 = arith.constant dense<0.000000e+00> : vector<8x128xf32>
    %19 = tpu.matmul %17, %18, %cst_14 {dimension_numbers = #tpu.dot_dimension_numbers<[1], [0], [0], [1], [0, 0, 1, 1], [], []>} : vector<8x32xbf16>, vector<32x128xbf16>, vector<8x128xf32> -> vector<8x128xf32>
    %c0_15 = arith.constant 0 : index
    %c0_16 = arith.constant 0 : index
    %20 = vector.load %arg7[%c0_15, %c0_16] : memref<1x128xf32, #tpu.memory_space<vmem>>, vector<1x128xf32>
    %21 = vector.broadcast %20 : vector<1x128xf32> to vector<8x128xf32>
    %22 = arith.addf %19, %21 : vector<8x128xf32>
    %c0_17 = arith.constant 0 : index
    %c0_18 = arith.constant 0 : index
    %23 = vector.load %arg8[%c0_17, %c0_18] : memref<8x128xf32, #tpu.memory_space<vmem>>, vector<8x128xf32>
    tpu.vector_store %arg8[%c0_17, %c0_18], %22 {strides = array<i32>} : memref<8x128xf32, #tpu.memory_space<vmem>>, vector<8x128xf32>,
    return
  }
  func.func @transform_0(%arg0: i32) -> (i32, i32) {
    %c0_i32 = arith.constant 0 : i32
    %c0_i32_0 = arith.constant 0 : i32
    return %arg0, %c0_i32 : i32, i32
  }
  func.func @transform_1(%arg0: i32) -> (i32, i32) {
    %c0_i32 = arith.constant 0 : i32
    %c0_i32_0 = arith.constant 0 : i32
    %c0_i32_1 = arith.constant 0 : i32
    return %c0_i32, %c0_i32_0 : i32, i32
  }
  func.func @transform_2(%arg0: i32) -> (i32, i32) {
    %c0_i32 = arith.constant 0 : i32
    %c0_i32_0 = arith.constant 0 : i32
    %c0_i32_1 = arith.constant 0 : i32
    return %c0_i32, %c0_i32_0 : i32, i32
  }
  func.func @transform_3(%arg0: i32) -> (i32, i32) {
    %c0_i32 = arith.constant 0 : i32
    %c0_i32_0 = arith.constant 0 : i32
    %c0_i32_1 = arith.constant 0 : i32
    return %c0_i32, %c0_i32_0 : i32, i32
  }
  func.func @transform_4(%arg0: i32) -> (i32, i32) {
    %c0_i32 = arith.constant 0 : i32
    %c0_i32_0 = arith.constant 0 : i32
    %c0_i32_1 = arith.constant 0 : i32
    return %c0_i32, %c0_i32_0 : i32, i32
  }
  func.func @transform_5(%arg0: i32) -> (i32, i32) {
    %c0_i32 = arith.constant 0 : i32
    %c0_i32_0 = arith.constant 0 : i32
    %c0_i32_1 = arith.constant 0 : i32
    return %c0_i32, %c0_i32_0 : i32, i32
  }
  func.func @transform_6(%arg0: i32) -> (i32, i32) {
    %c0_i32 = arith.constant 0 : i32
    %c0_i32_0 = arith.constant 0 : i32
    %c0_i32_1 = arith.constant 0 : i32
    return %c0_i32, %c0_i32_0 : i32, i32
  }
  func.func @transform_7(%arg0: i32) -> (i32, i32) {
    %c0_i32 = arith.constant 0 : i32
    %c0_i32_0 = arith.constant 0 : i32
    return %arg0, %c0_i32 : i32, i32
  }
}

module attributes {stable_mosaic.version = 11 : i64} {
  func.func @_mlp_kernel(%arg0: i32, %arg1: memref<8x32xf32, #tpu.memory_space<vmem>>, %arg2: memref<32x64xbf16, #tpu.memory_space<vmem>>, %arg3: memref<1x64xf32, #tpu.memory_space<vmem>>, %arg4: memref<64x32xbf16, #tpu.memory_space<vmem>>, %arg5: memref<1x32xf32, #tpu.memory_space<vmem>>, %arg6: memref<32x128xbf16, #tpu.memory_space<vmem>>, %arg7: memref<1x128xf32, #tpu.memory_space<vmem>>, %arg8: memref<8x128xf32, #tpu.memory_space<vmem>>) attributes {dimension_semantics = [#tpu.dimension_semantics<parallel>], iteration_bounds = array<i64: 1>, scalar_prefetch = 0 : i64, scratch_operands = 0 : i64, tpu.core_type = #tpu.core_type<tc>, window_params = [{transform_indices = @transform_0, window_bounds = array<i64: 8, 32>}, {pipeline_mode = #tpu.pipeline_mode<synchronous>, transform_indices = @transform_1, window_bounds = array<i64: 32, 64>}, {pipeline_mode = #tpu.pipeline_mode<synchronous>, transform_indices = @transform_2, window_bounds = array<i64: 1, 64>}, {pipeline_mode = #tpu.pipeline_mode<synchronous>, transform_indices = @transform_3, window_bounds = array<i64: 64, 32>}, {pipeline_mode = #tpu.pipeline_mode<synchronous>, transform_indices = @transform_4, window_bounds = array<i64: 1, 32>}, {pipeline_mode = #tpu.pipeline_mode<synchronous>, transform_indices = @transform_5, window_bounds = array<i64: 32, 128>}, {pipeline_mode = #tpu.pipeline_mode<synchronous>, transform_indices = @transform_6, window_bounds = array<i64: 1, 128>}, {transform_indices = @transform_7, window_bounds = array<i64: 8, 128>}]} {
    %c0 = arith.constant 0 : index
    %c0_0 = arith.constant 0 : index
    %0 = vector.load %arg1[%c0, %c0_0] : memref<8x32xf32, #tpu.memory_space<vmem>>, vector<8x32xf32>
    %1 = arith.truncf %0 : vector<8x32xf32> to vector<8x32xbf16>
    %c0_1 = arith.constant 0 : index
    %c0_2 = arith.constant 0 : index
    %2 = vector.load %arg2[%c0_1, %c0_2] : memref<32x64xbf16, #tpu.memory_space<vmem>>, vector<32x64xbf16>
    %cst = arith.constant dense<0.000000e+00> : vector<8x64xf32>
    %3 = tpu.matmul %1, %2, %cst {dimension_numbers = #tpu.dot_dimension_numbers<[1], [0], [0], [1], [0, 0, 1, 1], [], []>} : vector<8x32xbf16>, vector<32x64xbf16>, vector<8x64xf32> -> vector<8x64xf32>
    %c0_3 = arith.constant 0 : index
    %c0_4 = arith.constant 0 : index
    %4 = vector.load %arg3[%c0_3, %c0_4] : memref<1x64xf32, #tpu.memory_space<vmem>>, vector<1x64xf32>
    %5 = vector.broadcast %4 : vector<1x64xf32> to vector<8x64xf32>
    %6 = arith.addf %3, %5 : vector<8x64xf32>
    %cst_5 = arith.constant 0.000000e+00 : f32
    %7 = vector.broadcast %cst_5 : f32 to vector<8x64xf32>
    %8 = arith.maximumf %6, %7 : vector<8x64xf32>
    %9 = arith.truncf %8 : vector<8x64xf32> to vector<8x64xbf16>
    %c0_6 = arith.constant 0 : index
    %c0_7 = arith.constant 0 : index
    %10 = vector.load %arg4[%c0_6, %c0_7] : memref<64x32xbf16, #tpu.memory_space<vmem>>, vector<64x32xbf16>
    %cst_8 = arith.constant dense<0.000000e+00> : vector<8x32xf32>
    %11 = tpu.matmul %9, %10, %cst_8 {dimension_numbers = #tpu.dot_dimension_numbers<[1], [0], [0], [1], [0, 0, 1, 1], [], []>} : vector<8x64xbf16>, vector<64x32xbf16>, vector<8x32xf32> -> vector<8x32xf32>
    %c0_9 = arith.constant 0 : index
    %c0_10 = arith.constant 0 : index
    %12 = vector.load %arg5[%c0_9, %c0_10] : memref<1x32xf32, #tpu.memory_space<vmem>>, vector<1x32xf32>
    %13 = vector.broadcast %12 : vector<1x32xf32> to vector<8x32xf32>
    %14 = arith.addf %11, %13 : vector<8x32xf32>
    %cst_11 = arith.constant 0.000000e+00 : f32
    %15 = vector.broadcast %cst_11 : f32 to vector<8x32xf32>
    %16 = arith.maximumf %14, %15 : vector<8x32xf32>
    %17 = arith.truncf %16 : vector<8x32xf32> to vector<8x32xbf16>
    %c0_12 = arith.constant 0 : index
    %c0_13 = arith.constant 0 : index
    %18 = vector.load %arg6[%c0_12, %c0_13] : memref<32x128xbf16, #tpu.memory_space<vmem>>, vector<32x128xbf16>
    %cst_14 = arith.constant dense<0.000000e+00> : vector<8x128xf32>
    %19 = tpu.matmul %17, %18, %cst_14 {dimension_numbers = #tpu.dot_dimension_numbers<[1], [0], [0], [1], [0, 0, 1, 1], [], []>} : vector<8x32xbf16>, vector<32x128xbf16>, vector<8x128xf32> -> vector<8x128xf32>
    %c0_15 = arith.constant 0 : index
    %c0_16 = arith.constant 0 : index
    %20 = vector.load %arg7[%c0_15, %c0_16] : memref<1x128xf32, #tpu.memory_space<vmem>>, vector<1x128xf32>
    %21 = vector.broadcast %20 : vector<1x128xf32> to vector<8x128xf32>
    %22 = arith.addf %19, %21 : vector<8x128xf32>
    %c0_17 = arith.constant 0 : index
    %c0_18 = arith.constant 0 : index
    %23 = vector.load %arg8[%c0_17, %c0_18] : memref<8x128xf32, #tpu.memory_space<vmem>>, vector<8x128xf32>
    tpu.vector_store %arg8[%c0_17, %c0_18], %22 {strides = array<i32>} : memref<8x128xf32, #tpu.memory_space<vmem>>, vector<8x128xf32>,
    return
  }
  func.func @transform_0(%arg0: i32) -> (i32, i32) {
    %c0_i32 = arith.constant 0 : i32
    %c0_i32_0 = arith.constant 0 : i32
    return %arg0, %c0_i32 : i32, i32
  }
  func.func @transform_1(%arg0: i32) -> (i32, i32) {
    %c0_i32 = arith.constant 0 : i32
    %c0_i32_0 = arith.constant 0 : i32
    %c0_i32_1 = arith.constant 0 : i32
    return %c0_i32, %c0_i32_0 : i32, i32
  }
  func.func @transform_2(%arg0: i32) -> (i32, i32) {
    %c0_i32 = arith.constant 0 : i32
    %c0_i32_0 = arith.constant 0 : i32
    %c0_i32_1 = arith.constant 0 : i32
    return %c0_i32, %c0_i32_0 : i32, i32
  }
  func.func @transform_3(%arg0: i32) -> (i32, i32) {
    %c0_i32 = arith.constant 0 : i32
    %c0_i32_0 = arith.constant 0 : i32
    %c0_i32_1 = arith.constant 0 : i32
    return %c0_i32, %c0_i32_0 : i32, i32
  }
  func.func @transform_4(%arg0: i32) -> (i32, i32) {
    %c0_i32 = arith.constant 0 : i32
    %c0_i32_0 = arith.constant 0 : i32
    %c0_i32_1 = arith.constant 0 : i32
    return %c0_i32, %c0_i32_0 : i32, i32
  }
  func.func @transform_5(%arg0: i32) -> (i32, i32) {
    %c0_i32 = arith.constant 0 : i32
    %c0_i32_0 = arith.constant 0 : i32
    %c0_i32_1 = arith.constant 0 : i32
    return %c0_i32, %c0_i32_0 : i32, i32
  }
  func.func @transform_6(%arg0: i32) -> (i32, i32) {
    %c0_i32 = arith.constant 0 : i32
    %c0_i32_0 = arith.constant 0 : i32
    %c0_i32_1 = arith.constant 0 : i32
    return %c0_i32, %c0_i32_0 : i32, i32
  }
  func.func @transform_7(%arg0: i32) -> (i32, i32) {
    %c0_i32 = arith.constant 0 : i32
    %c0_i32_0 = arith.constant 0 : i32
    return %arg0, %c0_i32 : i32, i32
  }
}

</mosaic_0001>

<bundles_post_ra>
// kernel: _predictor_call.1
= control target key start
LH: loop header
LB: loop body
LE: loop exit
PB: predicated region body
PF: predicated region fallthrough
CT: control target
= control target key end

     0   :  { %v351_v1 = vmov 0.0   ;;  %vm352_vm0 = vmmov 0   ;;  %vm53_vm1 = vcmask 261120   ;;  %s438_s0 = inlined_call_operand.vmem [shape: f32[8,32], index: 0, kind: input, shape index: {}]   ;;  %s439_s1 = inlined_call_operand.vmem [shape: bf16[32,64], index: 1, kind: input, shape index: {}]   ;;  %s440_s2 = inlined_call_operand.vmem [shape: f32[1,64], index: 2, kind: input, shape index: {}]   ;;  %s441_s3 = inlined_call_operand.vmem [shape: bf16[64,32], index: 3, kind: input, shape index: {}]   ;;  %s442_s4 = inlined_call_operand.vmem [shape: f32[1,32], index: 4, kind: input, shape index: {}]   ;;  %s443_s5 = inlined_call_operand.vmem [shape: bf16[32,128], index: 5, kind: input, shape index: {}]   ;;  %s444_s6 = inlined_call_operand.vmem [shape: f32[1,128], index: 6, kind: input, shape index: {}]   ;;  %s445_s7 = inlined_call_operand.hbm [shape: f32[8,128], index: 7, kind: output, shape index: {}]  }
   0x1   :  { %v321_v0 = vld [vmem:[%s439_s1 + $0x8] sm:$0xff]   ;;  %290 = vmatprep.subr.bf16.mxu0 %v351_v1  ;;  %v322_v2 = vld [vmem:[%s439_s1] sm:$0xff]   ;;  %298 = vmatprep.subr.bf16.mxu1 %v351_v1  ;;  %v323_v4 = vld [vmem:[%s441_s3 + $0x18] sm:$0xff]  }
   0x2   :  { %291 = vmatpush3.bf16.msra.mxu0 %v321_v0  ;;  %294 = vmatprep.mubr.msk.bf16.mxu0 %vm352_vm0, %v351_v1  ;;  %v28_v3 = vld [vmem:[%s438_s0] sm:$0xff]  ;;  %v324_v5 = vld [vmem:[%s441_s3 + $0x10] sm:$0xff]  }
   0x3   :  { %292 = vmatprep.subr.bf16.mxu0 %v351_v1  ;;  %306 = vmatprep.mubr.msk.bf16.mxu1 %vm352_vm0, %v351_v1  ;;  %v29_v6 = vpack.c.bf16 %v28_v3, %v28_v3 }
   0x4   :  { %299 = vmatpush3.bf16.msra.mxu1 %v323_v4 }
   0x5   :  { %300 = vmatprep.subr.bf16.mxu1 %v351_v1 }
   0x6   :  { %293 = vmatpush3.bf16.msra.mxu0 %v322_v2 }
   0x7   :  { %310 = vmatprep.subr.bf16.mxu0 %v351_v1 }
   0x8   :  { %12 = vsyncpa [#allocation3], 0  ;;  %301 = vmatpush3.bf16.msra.mxu1 %v324_v5  ;;  %v325_v7 = vld [vmem:[%s441_s3 + $0x8] sm:$0xff]   ;;  %v326_v8 = vld [vmem:[%s441_s3] sm:$0xff]   ;;  %vm138_vm2 = vcmask 523264   ;;  %s353_s21 = smov [#allocation2]  }
   0x9   :  { %295 = vmatmul.mubr.msk.bf16.vlgmr.msra.gmra.mxu0 %vm53_vm1, %v29_v6  ;;  %302 = vmatprep.subr.bf16.mxu1 %v351_v1  ;;  %v327_v9 = vld [vmem:[%s443_s5 + $0x8] sm:$0xff]   ;;  %v265_v10 = vld [vmem:[%s440_s2] ss:$0 sm:$0xff] }
   0xa   :  { %314 = vmatprep.mubr.msk.bf16.mxu0 %vm352_vm0, %v351_v1  ;;  %311 = vmatpush3.bf16.msra.mxu0 %v327_v9  ;;  %v328_v18 = vld [vmem:[%s443_s5] sm:$0xff]   ;;  %s257_s5 = sshll.u32 %s353_s21, 4  ;;  %s258_s5 = int_to_ptr.vmem [resolvable:$true] %s257_s5 }
   0xb   :  { %312 = vmatprep.subr.bf16.mxu0 %v351_v1  ;;  %v269_v19 = vld [vmem:[%s442_s4] ss:$0 sm:$0xff]  ;;  %s329_s4 = scalar_lea.vmem %s258_s5, 128  ;;  %p334_p1 = scmp.lt.s32.totalorder %s258_s5, %s258_s5 }
   0xc   :  { %303 = vmatpush3.bf16.msra.mxu1 %v325_v7  ;;  %v275_v27 = vld [vmem:[%s444_s6] ss:$0 sm:$0xff]  ;;  %p330_p0 = scmp.ne.s32.totalorder %s258_s5, %s329_s4  ;;  %p335_p2 = scmp.lt.s32.totalorder %s329_s4, %s329_s4 }
   0xd   :  { %304 = vmatprep.subr.bf16.mxu1 %v351_v1 }
   0xe   :  { %313 = vmatpush3.bf16.msra.mxu0 %v328_v18  ;;  %p336_p3 = por %p335_p2, %p334_p1 }
  0x10   :  { %305 = vmatpush3.bf16.msra.mxu1 %v326_v8  ;;  %p337_p4 = pnand %p336_p3, %p330_p0 }
  0xc9   :  { %v91_v11 = vpop.f32.mrf.mxu0 }
  0xca   :  { %v92_v12 = vadd.f32 %v265_v10, %v91_v11 }
  0xcb   :  { %v296_v13 = vpop.f32.mrf.mxu0 }
  0xcc   :  { %v97_v14 = vmax.f32 %v92_v12, 0.0 }
  0xcd   :  { %v94_v15 = vpop.f32.mrf.mxu0 }
  0xce   :  { %v98_v16 = vpack.c.bf16 %v97_v14, %v97_v14 }
  0xcf   :  { %v297_v17 = vpop.f32.mrf.mxu0 }
  0xd0   :  { %307 = vmatmul.mubr.msk.bf16.vlgmr.msra.gmra.mxu1 %vm138_vm2, %v98_v16 }
 0x190   :  { %v176_v20 = vpop.f32.mrf.mxu1 }
 0x191   :  { %v177_v21 = vadd.f32 %v269_v19, %v176_v20 }
 0x192   :  { %v308_v22 = vpop.f32.mrf.mxu1 }
 0x193   :  { %v182_v23 = vmax.f32 %v177_v21, 0.0 }
 0x194   :  { %v179_v24 = vpop.f32.mrf.mxu1 }
 0x195   :  { %v183_v25 = vpack.c.bf16 %v182_v23, %v182_v23 }
 0x196   :  { %v309_v26 = vpop.f32.mrf.mxu1 }
 0x197   :  { %315 = vmatmul.mubr.msk.bf16.vlgmr.msra.gmra.mxu0 %vm53_vm1, %v183_v25 }
 0x257   :  { %v244_v28 = vpop.f32.mrf.mxu0 }
 0x258   :  { %v245_v29 = vadd.f32 %v275_v27, %v244_v28 }
 0x259   :  { %v316_v30 = vpop.f32.mrf.mxu0 }
 0x25a   :  { %250 = vst [vmem:[#allocation2] sm:$0xff] %v245_v29 }
 0x25b   :  { %v247_v31 = vpop.f32.mrf.mxu0 }
 0x25c   :  { %340 = shalt.err (!%p337_p4)
}
 0x25d   :  { %260 = dma.vmem_to_hbm [thread:$0]  %s258_s5, 128, %s445_s7, [#allocation3]   ;;  %v317_v32 = vpop.f32.mrf.mxu0 }
 0x25e   :  { %349 = dma.done.wait [#allocation3], 128  }
 0x25f   :  { %350 = vsyncadd [#allocation3], 4294967168 }
 0x260   :  { %264 = vsyncpa [#allocation3], 1 }

// kernel: _predictor_call.1
= control target key start
LH: loop header
LB: loop body
LE: loop exit
PB: predicated region body
PF: predicated region fallthrough
CT: control target
= control target key end

     0   :  { %v351_v1 = vmov 0.0   ;;  %vm352_vm0 = vmmov 0   ;;  %vm53_vm1 = vcmask 261120   ;;  %s438_s0 = inlined_call_operand.vmem [shape: f32[8,32], index: 0, kind: input, shape index: {}]   ;;  %s439_s1 = inlined_call_operand.vmem [shape: bf16[32,64], index: 1, kind: input, shape index: {}]   ;;  %s440_s2 = inlined_call_operand.vmem [shape: f32[1,64], index: 2, kind: input, shape index: {}]   ;;  %s441_s3 = inlined_call_operand.vmem [shape: bf16[64,32], index: 3, kind: input, shape index: {}]   ;;  %s442_s4 = inlined_call_operand.vmem [shape: f32[1,32], index: 4, kind: input, shape index: {}]   ;;  %s443_s5 = inlined_call_operand.vmem [shape: bf16[32,128], index: 5, kind: input, shape index: {}]   ;;  %s444_s6 = inlined_call_operand.vmem [shape: f32[1,128], index: 6, kind: input, shape index: {}]   ;;  %s445_s7 = inlined_call_operand.hbm [shape: f32[8,128], index: 7, kind: output, shape index: {}]  }
   0x1   :  { %v321_v0 = vld [vmem:[%s439_s1 + $0x8] sm:$0xff]   ;;  %290 = vmatprep.subr.bf16.mxu0 %v351_v1  ;;  %v322_v2 = vld [vmem:[%s439_s1] sm:$0xff]   ;;  %298 = vmatprep.subr.bf16.mxu1 %v351_v1  ;;  %v323_v4 = vld [vmem:[%s441_s3 + $0x18] sm:$0xff]  }
   0x2   :  { %291 = vmatpush3.bf16.msra.mxu0 %v321_v0  ;;  %294 = vmatprep.mubr.msk.bf16.mxu0 %vm352_vm0, %v351_v1  ;;  %v28_v3 = vld [vmem:[%s438_s0] sm:$0xff]  ;;  %v324_v5 = vld [vmem:[%s441_s3 + $0x10] sm:$0xff]  }
   0x3   :  { %292 = vmatprep.subr.bf16.mxu0 %v351_v1  ;;  %306 = vmatprep.mubr.msk.bf16.mxu1 %vm352_vm0, %v351_v1  ;;  %v29_v6 = vpack.c.bf16 %v28_v3, %v28_v3 }
   0x4   :  { %299 = vmatpush3.bf16.msra.mxu1 %v323_v4 }
   0x5   :  { %300 = vmatprep.subr.bf16.mxu1 %v351_v1 }
   0x6   :  { %293 = vmatpush3.bf16.msra.mxu0 %v322_v2 }
   0x7   :  { %310 = vmatprep.subr.bf16.mxu0 %v351_v1 }
   0x8   :  { %12 = vsyncpa [#allocation3], 0  ;;  %301 = vmatpush3.bf16.msra.mxu1 %v324_v5  ;;  %v325_v7 = vld [vmem:[%s441_s3 + $0x8] sm:$0xff]   ;;  %v326_v8 = vld [vmem:[%s441_s3] sm:$0xff]   ;;  %vm138_vm2 = vcmask 523264   ;;  %s353_s21 = smov [#allocation2]  }
   0x9   :  { %295 = vmatmul.mubr.msk.bf16.vlgmr.msra.gmra.mxu0 %vm53_vm1, %v29_v6  ;;  %302 = vmatprep.subr.bf16.mxu1 %v351_v1  ;;  %v327_v9 = vld [vmem:[%s443_s5 + $0x8] sm:$0xff]   ;;  %v265_v10 = vld [vmem:[%s440_s2] ss:$0 sm:$0xff] }
   0xa   :  { %314 = vmatprep.mubr.msk.bf16.mxu0 %vm352_vm0, %v351_v1  ;;  %311 = vmatpush3.bf16.msra.mxu0 %v327_v9  ;;  %v328_v18 = vld [vmem:[%s443_s5] sm:$0xff]   ;;  %s257_s5 = sshll.u32 %s353_s21, 4  ;;  %s258_s5 = int_to_ptr.vmem [resolvable:$true] %s257_s5 }
   0xb   :  { %312 = vmatprep.subr.bf16.mxu0 %v351_v1  ;;  %v269_v19 = vld [vmem:[%s442_s4] ss:$0 sm:$0xff]  ;;  %s329_s4 = scalar_lea.vmem %s258_s5, 128  ;;  %p334_p1 = scmp.lt.s32.totalorder %s258_s5, %s258_s5 }
   0xc   :  { %303 = vmatpush3.bf16.msra.mxu1 %v325_v7  ;;  %v275_v27 = vld [vmem:[%s444_s6] ss:$0 sm:$0xff]  ;;  %p330_p0 = scmp.ne.s32.totalorder %s258_s5, %s329_s4  ;;  %p335_p2 = scmp.lt.s32.totalorder %s329_s4, %s329_s4 }
   0xd   :  { %304 = vmatprep.subr.bf16.mxu1 %v351_v1 }
   0xe   :  { %313 = vmatpush3.bf16.msra.mxu0 %v328_v18  ;;  %p336_p3 = por %p335_p2, %p334_p1 }
  0x10   :  { %305 = vmatpush3.bf16.msra.mxu1 %v326_v8  ;;  %p337_p4 = pnand %p336_p3, %p330_p0 }
  0xc9   :  { %v91_v11 = vpop.f32.mrf.mxu0 }
  0xca   :  { %v92_v12 = vadd.f32 %v265_v10, %v91_v11 }
  0xcb   :  { %v296_v13 = vpop.f32.mrf.mxu0 }
  0xcc   :  { %v97_v14 = vmax.f32 %v92_v12, 0.0 }
  0xcd   :  { %v94_v15 = vpop.f32.mrf.mxu0 }
  0xce   :  { %v98_v16 = vpack.c.bf16 %v97_v14, %v97_v14 }
  0xcf   :  { %v297_v17 = vpop.f32.mrf.mxu0 }
  0xd0   :  { %307 = vmatmul.mubr.msk.bf16.vlgmr.msra.gmra.mxu1 %vm138_vm2, %v98_v16 }
 0x190   :  { %v176_v20 = vpop.f32.mrf.mxu1 }
 0x191   :  { %v177_v21 = vadd.f32 %v269_v19, %v176_v20 }
 0x192   :  { %v308_v22 = vpop.f32.mrf.mxu1 }
 0x193   :  { %v182_v23 = vmax.f32 %v177_v21, 0.0 }
 0x194   :  { %v179_v24 = vpop.f32.mrf.mxu1 }
 0x195   :  { %v183_v25 = vpack.c.bf16 %v182_v23, %v182_v23 }
 0x196   :  { %v309_v26 = vpop.f32.mrf.mxu1 }
 0x197   :  { %315 = vmatmul.mubr.msk.bf16.vlgmr.msra.gmra.mxu0 %vm53_vm1, %v183_v25 }
 0x257   :  { %v244_v28 = vpop.f32.mrf.mxu0 }
 0x258   :  { %v245_v29 = vadd.f32 %v275_v27, %v244_v28 }
 0x259   :  { %v316_v30 = vpop.f32.mrf.mxu0 }
 0x25a   :  { %250 = vst [vmem:[#allocation2] sm:$0xff] %v245_v29 }
 0x25b   :  { %v247_v31 = vpop.f32.mrf.mxu0 }
 0x25c   :  { %340 = shalt.err (!%p337_p4)
}
 0x25d   :  { %260 = dma.vmem_to_hbm [thread:$0]  %s258_s5, 128, %s445_s7, [#allocation3]   ;;  %v317_v32 = vpop.f32.mrf.mxu0 }
 0x25e   :  { %349 = dma.done.wait [#allocation3], 128  }
 0x25f   :  { %350 = vsyncadd [#allocation3], 4294967168 }
 0x260   :  { %264 = vsyncpa [#allocation3], 1 }

</bundles_post_ra>
